<compile_context>
chip_gen: v7x
topology: tpu7x:2x2x1
jax: 0.10.0
libtpu: 0.0.40
codegen_flags: <defaults>
</compile_context>

<pallas_src>
import jax
import jax.numpy as jnp
from jax.experimental import pallas as pl
from jax.experimental.pallas import tpu as pltpu


_SUBLANE = {4: 8, 2: 16, 1: 32}


def _round_up(v, m):
    return ((v + m - 1) // m) * m


# ---------------------------------------------------------------------------
# Kernels
# ---------------------------------------------------------------------------

def _kernel_single(x_ref, w_ref, b_ref, o_ref):
    # x_ref: (tm, tk) VMEM tile of x
    # w_ref: (1, tk)  VMEM weight (constant block index -> fetched once)
    # b_ref: (1,)     SMEM scalar bias
    # o_ref: (tm, 1)  VMEM output tile
    x = x_ref[...].astype(jnp.float32)
    w = w_ref[...].astype(jnp.float32)          # broadcasts over sublanes
    o_ref[...] = (jnp.sum(x * w, axis=-1, keepdims=True) + b_ref[0]).astype(o_ref.dtype)


def _kernel_multi(x_ref, w_ref, b_ref, o_ref, acc_ref):
    # Feature-dim reduction over grid axis 1 with a lane-dense accumulator.
    # x_ref: (tm, tk) with tk % 128 == 0; w_ref: (1, tk); acc_ref: (tm, 128) f32.
    k = pl.program_id(1)

    @pl.when(k == 0)
    def _():
        acc_ref[...] = jnp.zeros_like(acc_ref)

    xw = x_ref[...].astype(jnp.float32) * w_ref[...].astype(jnp.float32)
    tk = xw.shape[-1]
    # Fold the tk lanes down to 128 with unmasked full-vreg VPU adds
    # (static slices, fully unrolled); no per-step cross-lane reduce.
    partial = xw[:, 0:128]
    for c in range(1, tk // 128):
        partial = partial + xw[:, c * 128:(c + 1) * 128]
    acc_ref[...] += partial

    @pl.when(k == pl.num_programs(1) - 1)
    def _():
        # Single cross-lane (XLU) reduce at the very end, then bias.
        o_ref[...] = (jnp.sum(acc_ref[...], axis=-1, keepdims=True)
                      + b_ref[0]).astype(o_ref.dtype)


# ---------------------------------------------------------------------------
# Tile / VMEM sizing
# ---------------------------------------------------------------------------

def _vmem_budget():
    """Return (vmem_limit_bytes, per-x-buffer byte budget), generation-aware."""
    try:
        info = pltpu.get_tpu_info()
        cap = int(getattr(info, "vmem_capacity_bytes", 64 * 2**20))
    except Exception:
        cap = 64 * 2**20                       # conservative: v7x-sized VMEM
    if cap <= 64 * 2**20:
        limit = cap - 16 * 2**20               # ~48 MiB scoped on v7x
    else:
        limit = min(cap - 32 * 2**20, 96 * 2**20)   # v5e/v6e (128 MiB VMEM)
    limit = max(limit, 32 * 2**20)
    # Two x buffers (double-buffered) dominate; leave room for weight/out/acc
    # buffers after their (8,128) layout padding.
    x_budget = max(2 * 2**20, min((limit - 8 * 2**20) // 2, 32 * 2**20))
    return limit, x_budget


def _choose_tiles(B, A_active, itemsize, sublane, x_budget):
    """Byte-based (tm, tk) selection.  tk always divides A_active."""
    MIN_TM = 256

    def rows_for(tk_):
        bytes_per_row = _round_up(tk_, 128) * itemsize   # lane padding
        return max(sublane, (x_budget // bytes_per_row) // sublane * sublane)

    tk = A_active
    tm_max = rows_for(tk)
    if tm_max < min(MIN_TM, _round_up(B, sublane)) and A_active % 128 == 0:
        # Very wide feature dim: shrink tk (128-multiple divisor of A_active)
        # so batch tiles stay >= MIN_TM rows; reduce over a second grid axis.
        for cand in (65536, 32768, 16384, 8192, 4096, 2048, 1024, 512, 256, 128):
            if cand < A_active and A_active % cand == 0 and rows_for(cand) >= MIN_TM:
                tk = cand
                break
        tm_max = rows_for(tk)

    if B <= tm_max:
        if B >= 2 * sublane:
            # Whole batch fits, but split into 2 balanced tiles so the
            # "parallel" axis can shard across v7x's two TensorCores.
            tm = _round_up(-(-B // 2), sublane)
        else:
            tm = B                      # tiny batch: full-dim block is legal
    else:
        tm = tm_max
    return tm, tk


# ---------------------------------------------------------------------------
# Wrapper
# ---------------------------------------------------------------------------

def output_layer(x, weight, bias, *, columns_num=None, tile_override=None):
    """Forward pass of OutputLayer: x @ weight.T + bias.

    x: (..., all_num); weight: (1, all_num); bias: (1,).  Returns (..., 1).

    If `columns_num` is given, the kernel assumes weight[0, columns_num:] == 0
    (the module's deterministic init) and only reads the first
    round_up(columns_num, 128) feature columns of x, cutting HBM traffic by up
    to all_num / columns_num.  Pass columns_num=None for a weight that has
    been trained away from its init (fully generic path).
    """
    *lead, A = x.shape
    assert weight.shape == (1, A)
    assert bias.shape == (1,)

    x2 = x.reshape(-1, A)
    B = x2.shape[0]
    itemsize = x2.dtype.itemsize
    sublane = _SUBLANE.get(itemsize, 8)

    if columns_num is None:
        A_active = A
    else:
        A_active = min(A, _round_up(max(1, int(columns_num)), 128))

    vmem_limit, x_budget = _vmem_budget()
    if tile_override is not None:
        tm, tk = tile_override
    else:
        tm, tk = _choose_tiles(B, A_active, itemsize, sublane, x_budget)

    grid_m = -(-B // tm)
    grid_k = A_active // tk
    assert tk * grid_k == A_active, "feature tile must divide the active width"
    if grid_k > 1:
        assert tk % 128 == 0, "multi-step feature tiles must be 128-multiples"

    bytes_accessed = (B * A_active * itemsize
                      + A_active * weight.dtype.itemsize
                      + B * x2.dtype.itemsize)
    cost = pl.CostEstimate(flops=2 * B * A_active, transcendentals=0,
                           bytes_accessed=bytes_accessed)

    bias_spec = pl.BlockSpec(memory_space=pltpu.MemorySpace.SMEM)

    if grid_k == 1:
        # Common case: whole (active) feature range in one tile -> no
        # accumulator, no pl.when, weight resident (constant block index).
        grid_spec = pltpu.PrefetchScalarGridSpec(
            num_scalar_prefetch=0,
            grid=(grid_m,),
            in_specs=[
                pl.BlockSpec((tm, tk), lambda i: (i, 0)),   # x tile
                pl.BlockSpec((1, tk), lambda i: (0, 0)),    # weight (once)
                bias_spec,
            ],
            out_specs=pl.BlockSpec((tm, 1), lambda i: (i, 0)),
        )
        kernel = _kernel_single
        dims = ("parallel",)
    else:
        grid_spec = pltpu.PrefetchScalarGridSpec(
            num_scalar_prefetch=0,
            grid=(grid_m, grid_k),
            in_specs=[
                pl.BlockSpec((tm, tk), lambda i, k: (i, k)),   # x tile
                pl.BlockSpec((1, tk), lambda i, k: (0, k)),    # weight slice
                bias_spec,
            ],
            out_specs=pl.BlockSpec((tm, 1), lambda i, k: (i, 0)),
            scratch_shapes=[pltpu.VMEM((tm, 128), jnp.float32)],  # lane-dense acc
        )
        kernel = _kernel_multi
        dims = ("parallel", "arbitrary")

    out2 = pl.pallas_call(
        kernel,
        out_shape=jax.ShapeDtypeStruct((B, 1), x2.dtype),
        grid_spec=grid_spec,
        compiler_params=pltpu.CompilerParams(
            dimension_semantics=dims,
            vmem_limit_bytes=vmem_limit,
        ),
        cost_estimate=cost,
    )(x2, weight, bias)

    return out2.reshape(*lead, 1)


def make_params(columns_num, all_num, dtype=jnp.float32):
    """Deterministic init matching the PyTorch __init__."""
    weight = jnp.zeros((1, all_num), dtype=dtype)
    weight = weight.at[0, :columns_num].set(1.0 / columns_num)
    bias = jnp.zeros((1,), dtype=dtype)
    return weight, bias


if __name__ == "__main__":
    key = jax.random.PRNGKey(0)

    # 1) Typical small case for this module: single feature tile, tiny batch.
    columns_num, all_num, batch = 16, 32, 8
    x = jax.random.normal(key, (batch, all_num), dtype=jnp.float32)
    weight, bias = make_params(columns_num, all_num)
    ref = x @ weight.T + bias
    out = jax.block_until_ready(output_layer(x, weight, bias, columns_num=columns_num))
    assert out.shape == (batch, 1)
    assert jnp.allclose(out, ref, atol=1e-5, rtol=1e-5), "mismatch (small, fast path)"
    out_g = jax.block_until_ready(output_layer(x, weight, bias))   # generic path
    assert jnp.allclose(out_g, ref, atol=1e-5, rtol=1e-5), "mismatch (small, generic)"

    # 2) Column-skipping fast path: only the first 128 of 512 columns are read.
    columns_num2, all_num2, batch2 = 100, 512, 256
    x2 = jax.random.normal(jax.random.PRNGKey(0), (batch2, all_num2), dtype=jnp.float32)
    weight2, bias2 = make_params(columns_num2, all_num2)
    ref2 = x2 @ weight2.T + bias2
    out2 = jax.block_until_ready(
        output_layer(x2, weight2, bias2, columns_num=columns_num2))
    assert out2.shape == (batch2, 1)
    assert jnp.allclose(out2, ref2, atol=1e-4, rtol=1e-4), "mismatch (column skip)"

    # 3) Exercise the multi-tile feature-reduction path (forced small tiles).
    batch3, all_num3 = 64, 512
    x3 = jax.random.normal(jax.random.PRNGKey(0), (batch3, all_num3), dtype=jnp.float32)
    weight3, bias3 = make_params(200, all_num3)
    ref3 = x3 @ weight3.T + bias3
    out3 = jax.block_until_ready(
        output_layer(x3, weight3, bias3, tile_override=(32, 128)))
    assert out3.shape == (batch3, 1)
    assert jnp.allclose(out3, ref3, atol=1e-4, rtol=1e-4), "mismatch (k-reduction)"

    print("KERNEL_OK")
</pallas_src>

<mosaic_0001>
module attributes {stable_mosaic.version = 11 : i64} {
  func.func @_kernel_single(%arg0: i32, %arg1: memref<8x32xf32, #tpu.memory_space<vmem>>, %arg2: memref<1x32xf32, #tpu.memory_space<vmem>>, %arg3: memref<1xf32, #tpu.memory_space<smem>>, %arg4: memref<8x1xf32, #tpu.memory_space<vmem>>) attributes {dimension_semantics = [#tpu.dimension_semantics<parallel>], iteration_bounds = array<i64: 1>, scalar_prefetch = 0 : i64, scratch_operands = 0 : i64, tpu.core_type = #tpu.core_type<tc>, window_params = [{transform_indices = @transform_0, window_bounds = array<i64: 8, 32>}, {pipeline_mode = #tpu.pipeline_mode<synchronous>, transform_indices = @transform_1, window_bounds = array<i64: 1, 32>}, {transform_indices = @transform_2, window_bounds = array<i64: 1>}, {transform_indices = @transform_3, window_bounds = array<i64: 8, 1>}]} {
    %c0 = arith.constant 0 : index
    %c0_0 = arith.constant 0 : index
    %0 = vector.load %arg1[%c0, %c0_0] : memref<8x32xf32, #tpu.memory_space<vmem>>, vector<8x32xf32>
    %c0_1 = arith.constant 0 : index
    %c0_2 = arith.constant 0 : index
    %1 = vector.load %arg2[%c0_1, %c0_2] : memref<1x32xf32, #tpu.memory_space<vmem>>, vector<1x32xf32>
    %2 = vector.broadcast %1 : vector<1x32xf32> to vector<8x32xf32>
    %3 = arith.mulf %0, %2 : vector<8x32xf32>
    %cst = arith.constant dense<0.000000e+00> : vector<8xf32>
    %4 = vector.multi_reduction <add>, %3, %cst [1] : vector<8x32xf32> to vector<8xf32>
    %5 = vector.shape_cast %4 : vector<8xf32> to vector<8x1xf32>
    %c0_3 = arith.constant 0 : index
    %6 = memref.load %arg3[%c0_3] : memref<1xf32, #tpu.memory_space<smem>>
    %7 = vector.broadcast %6 : f32 to vector<8x1xf32>
    %8 = arith.addf %5, %7 : vector<8x1xf32>
    %c0_4 = arith.constant 0 : index
    %c0_5 = arith.constant 0 : index
    %9 = vector.load %arg4[%c0_4, %c0_5] : memref<8x1xf32, #tpu.memory_space<vmem>>, vector<8x1xf32>
    tpu.vector_store %arg4[%c0_4, %c0_5], %8 {strides = array<i32>} : memref<8x1xf32, #tpu.memory_space<vmem>>, vector<8x1xf32>,
    return
  }
  func.func @transform_0(%arg0: i32) -> (i32, i32) {
    %c0_i32 = arith.constant 0 : i32
    %c0_i32_0 = arith.constant 0 : i32
    return %arg0, %c0_i32 : i32, i32
  }
  func.func @transform_1(%arg0: i32) -> (i32, i32) {
    %c0_i32 = arith.constant 0 : i32
    %c0_i32_0 = arith.constant 0 : i32
    %c0_i32_1 = arith.constant 0 : i32
    return %c0_i32, %c0_i32_0 : i32, i32
  }
  func.func @transform_2(%arg0: i32) -> i32 {
    %c0_i32 = arith.constant 0 : i32
    %c0_i32_0 = arith.constant 0 : i32
    return %c0_i32 : i32
  }
  func.func @transform_3(%arg0: i32) -> (i32, i32) {
    %c0_i32 = arith.constant 0 : i32
    %c0_i32_0 = arith.constant 0 : i32
    return %arg0, %c0_i32 : i32, i32
  }
}

</mosaic_0001>

<bundles_post_ra>
// kernel: tpu_custom_call.1
= control target key start
LH: loop header
LB: loop body
LE: loop exit
PB: predicated region body
PF: predicated region fallthrough
CT: control target
= control target key end

     0   :  { %9 = vsyncpa [#allocation4], 0  ;;  %s76_s12 = smov [#allocation3]   ;;  %s118_s0 = inlined_call_operand.hbm [shape: f32[8,32], index: 0, kind: input, shape index: {}]   ;;  %s119_s1 = inlined_call_operand.vmem [shape: f32[1,32], index: 1, kind: input, shape index: {}]   ;;  %s120_s2 = inlined_call_operand.<no memory space> [shape: f32[1], index: 2, kind: input, shape index: {}]   ;;  %s121_s3 = inlined_call_operand.vmem [shape: f32[8,1], index: 3, kind: output, shape index: {}]  }
   0x1   :  { %s16_s13 = sshll.u32 %s76_s12, 4  ;;  %s52_s16 = scalar_lea.hbm %s118_s0, 128  ;;  %s17_s13 = int_to_ptr.vmem [resolvable:$true] %s16_s13 }
   0x2   :  { %p53_p0 = scmp.ne.s32.totalorder %s118_s0, %s52_s16  ;;  %p56_p1 = scmp.lt.u32.totalorder %s52_s16, %s118_s0 }
   0x4   :  { %p58_p2 = pnand %p56_p1, %p53_p0 }
   0x6   :  { %61 = shalt.err (!%p58_p2)
}
   0x7   :  { %s62_s21 = scalar_lea.vmem %s17_s13, 128  ;;  %p67_p4 = scmp.lt.s32.totalorder %s17_s13, %s17_s13 }
   0x8   :  { %p63_p3 = scmp.ne.s32.totalorder %s17_s13, %s62_s21  ;;  %p68_p5 = scmp.lt.s32.totalorder %s62_s21, %s62_s21 }
   0xa   :  { %p69_p6 = por %p68_p5, %p67_p4 }
   0xc   :  { %p70_p7 = pnand %p69_p6, %p63_p3 }
   0xe   :  { %73 = shalt.err (!%p70_p7)
}
   0xf   :  { %19 = dma.hbm_to_vmem [thread:$0]  %s118_s0, 128, %s17_s13, [#allocation4]  }
  0x10   :  { %74 = dma.done.wait [#allocation4], 128  }
  0x11   :  { %75 = vsyncadd [#allocation4], 4294967168  ;;  %v27_v0 = vld [vmem:[#allocation3] sm:$0xff]  ;;  %vm36_vm0 = vcmask 261120   ;;  %v41_v4 = vstv %s120_s2  ;;  %vm43_vm1 = vcmask 7168  }
  0x12   :  { %v50_v1 = vld [vmem:[%s119_s1] ss:$0 sm:$0xff] }
  0x13   :  { %v35_v2 = vmul.f32 %v50_v1, %v27_v0 }
  0x15   :  { %v37_v3 = vsel %vm36_vm0, %v35_v2, 0.0 }
  0x16   :  { %38 = vadd.xlane.f32.xlu0 %v37_v3 }
  0xa3   :  { %v39_v5 = vpop.xlane.xlu0 %38 }
  0xa4   :  { %v42_v6 = vadd.f32 %v41_v4, %v39_v5 }
  0xa6   :  { %44 = vst.msk [vmem:[%s121_s3] sm:$0xff] %vm43_vm1, %v42_v6 }
  0xa7   :  { %49 = vsyncpa [#allocation4], 1 }

</bundles_post_ra>
